<compile_context>
chip_gen: v7x
topology: tpu7x:2x2x1
jax: 0.10.0
libtpu: 0.0.40
codegen_flags: <defaults>
</compile_context>

<pallas_src>
import jax
import jax.numpy as jnp
from jax.experimental import pallas as pl
from jax.experimental.pallas import tpu as pltpu

_NEG_INF = -1e30


def _round_up(x, m):
    return (x + m - 1) // m * m


# ---------------------------------------------------------------------------
# Kernel
# ---------------------------------------------------------------------------
def _head_kernel(x_ref, w1_ref, b1_ref, w2_ref, b2_ref, o_ref):
    # x tile: [TB, H] in caller dtype.  Weights are bf16 in [in, out] layout
    # (pre-transposed once in the wrapper), biases are f32.
    x = x_ref[...].astype(jnp.bfloat16)                       # [TB, H]  bf16

    # dense: x @ W1 (standard contraction, no transpose), f32 MXU accumulation.
    h = jnp.dot(x, w1_ref[...], preferred_element_type=jnp.float32)  # [TB, H] f32
    h = h + b1_ref[...]

    # tanh in bf16 (EUP bf16 on v6e/v7x; f32-internal on v5e).  The result is
    # the second matmul's bf16 operand anyway, so precision is unchanged.
    h = jnp.tanh(h.astype(jnp.bfloat16))                      # [TB, H]  bf16

    # out_proj: h @ W2 -> [TB, Lp], f32 accumulation.  Padded label columns of
    # b2 hold -1e30 so they drop out of the softmax partition function.
    logits = jnp.dot(h, w2_ref[...], preferred_element_type=jnp.float32)
    logits = logits + b2_ref[...]                             # [TB, Lp] f32

    # Numerically stable log_softmax over the label axis.
    m = jnp.max(logits, axis=-1, keepdims=True)
    shifted = logits - m
    lse = jnp.log(jnp.sum(jnp.exp(shifted), axis=-1, keepdims=True))
    o_ref[...] = (shifted - lse).astype(o_ref.dtype)


# ---------------------------------------------------------------------------
# Parameter preparation (one-time / offline in production)
# ---------------------------------------------------------------------------
def prepare_head_params(dense_w, dense_b, out_w, out_b):
    """Convert PyTorch-layout params to kernel layout.

    dense_w: [H, H] (out, in), dense_b: [H]
    out_w:   [L, H] (out, in), out_b:   [L]
    Returns ((w1_t [H,H] bf16, b1 [1,H] f32, w2_t [H,Lp] bf16, b2 [1,Lp] f32), L).
    """
    H = dense_w.shape[1]
    L = out_w.shape[0]
    Lp = _round_up(L, 128)                       # lane-dense padded label axis

    w1_t = jnp.transpose(dense_w).astype(jnp.bfloat16)        # [H_in, H_out]
    b1 = dense_b.astype(jnp.float32).reshape(1, H)

    w2_t = jnp.transpose(out_w).astype(jnp.bfloat16)          # [H, L]
    w2_t = jnp.pad(w2_t, ((0, 0), (0, Lp - L)))               # [H, Lp]
    # Output is always f32, so the -1e30 padded bias is representable and the
    # padded columns produce finite (huge-negative) log-probs, sliced away.
    b2 = jnp.pad(out_b.astype(jnp.float32), (0, Lp - L),
                 constant_values=_NEG_INF).reshape(1, Lp)
    return (w1_t, b1, w2_t, b2), L


# ---------------------------------------------------------------------------
# Wrapper
# ---------------------------------------------------------------------------
def wav2vec2_classification_head_prepared(features, w1_t, b1, w2_t, b2,
                                          num_labels, *, block_b=1024):
    """features: [B, H] (any float dtype; kept as-is, cast in-VMEM).
    Prepared params from `prepare_head_params`.  Returns f32 log-probs [B, L]."""
    B, H = features.shape
    Lp = w2_t.shape[1]
    L = num_labels

    # Balanced batch tiling: bounds padding to < 8 rows.
    n_tiles = max(1, pl.cdiv(B, block_b))
    TB = _round_up(pl.cdiv(B, n_tiles), 8)
    B_pad = _round_up(B, TB)

    x = features
    if B_pad != B:
        x = jnp.pad(x, ((0, B_pad - B), (0, 0)))

    grid = (B_pad // TB,)

    # VMEM budget from the double-buffered working set + headroom.
    x_item = jnp.dtype(features.dtype).itemsize
    weight_bytes = H * H * 2 + H * Lp * 2 + (H + Lp) * 4      # bf16 W, f32 b
    stream_bytes = TB * H * x_item + TB * Lp * 4              # x tile + out tile
    vmem_limit = 2 * (stream_bytes + weight_bytes) + (4 << 20)
    vmem_limit = int(min(max(vmem_limit, 16 << 20), 128 << 20))

    out = pl.pallas_call(
        _head_kernel,
        out_shape=jax.ShapeDtypeStruct((B_pad, Lp), jnp.float32),
        grid=grid,
        in_specs=[
            pl.BlockSpec((TB, H), lambda i: (i, 0)),    # x: per-tile (pipelined)
            pl.BlockSpec((H, H), lambda i: (0, 0)),     # dense W^T: resident
            pl.BlockSpec((1, H), lambda i: (0, 0)),     # dense bias: resident
            pl.BlockSpec((H, Lp), lambda i: (0, 0)),    # out_proj W^T: resident
            pl.BlockSpec((1, Lp), lambda i: (0, 0)),    # out_proj bias: resident
        ],
        out_specs=pl.BlockSpec((TB, Lp), lambda i: (i, 0)),
        compiler_params=pltpu.CompilerParams(
            dimension_semantics=("parallel",),
            vmem_limit_bytes=vmem_limit,
        ),
    )(x, w1_t, b1, w2_t, b2)

    return out[:B, :L]


def wav2vec2_classification_head(features, dense_w, dense_b, out_w, out_b,
                                 *, block_b=1024):
    """Convenience wrapper taking PyTorch-layout [out, in] weights."""
    params, L = prepare_head_params(dense_w, dense_b, out_w, out_b)
    return wav2vec2_classification_head_prepared(features, *params, L,
                                                 block_b=block_b)


# ---------------------------------------------------------------------------
# Reference (emulates kernel numerics: bf16 operands, f32 accumulation,
# bf16 tanh, f32 log-softmax)
# ---------------------------------------------------------------------------
def _reference(features, dense_w, dense_b, out_w, out_b):
    f32 = jnp.float32
    x = features.astype(jnp.bfloat16).astype(f32)
    w1 = dense_w.astype(jnp.bfloat16).astype(f32)
    w2 = out_w.astype(jnp.bfloat16).astype(f32)
    h = x @ w1.T + dense_b.astype(f32)
    h = jnp.tanh(h.astype(jnp.bfloat16)).astype(f32)
    logits = h @ w2.T + out_b.astype(f32)
    return jax.nn.log_softmax(logits, axis=-1)


def _make_params(key, H, L):
    k_w1, k_b1, k_w2, k_b2 = jax.random.split(key, 4)
    dense_w = jax.random.uniform(k_w1, (H, H), jnp.float32, -0.1, 0.1)
    dense_b = jax.random.uniform(k_b1, (H,), jnp.float32, -0.1, 0.1)
    out_w = jax.random.uniform(k_w2, (L, H), jnp.float32, -0.1, 0.1)
    out_b = jax.random.uniform(k_b2, (L,), jnp.float32, -0.1, 0.1)
    return dense_w, dense_b, out_w, out_b


if __name__ == "__main__":
    key = jax.random.PRNGKey(0)
    k_small, k_big, k_xs, k_xb = jax.random.split(key, 4)

    # ---- Test 1: small shapes consistent with the module (grid=1 path) ----
    B, H, L = 8, 32, 4
    dense_w, dense_b, out_w, out_b = _make_params(k_small, H, L)
    features = jax.random.normal(k_xs, (B, H), dtype=jnp.float32)

    out = wav2vec2_classification_head(features, dense_w, dense_b, out_w, out_b)
    out = jax.block_until_ready(out)
    ref = _reference(features, dense_w, dense_b, out_w, out_b)

    assert out.shape == (B, L)
    assert out.dtype == jnp.float32
    assert jnp.allclose(out, ref, atol=2e-2, rtol=0), "small-shape mismatch"
    assert jnp.allclose(jnp.sum(jnp.exp(out), axis=-1), 1.0, atol=1e-3)

    # ---- Test 2: multi-tile grid, ragged batch padding, realistic H ----
    B2, H2, L2 = 601, 1024, 7
    dense_w2, dense_b2, out_w2, out_b2 = _make_params(k_big, H2, L2)
    features2 = jax.random.normal(k_xb, (B2, H2), dtype=jnp.float32)

    # block_b=256 -> 3 balanced tiles of 208 rows (23 padded rows), Lp=128.
    out2 = wav2vec2_classification_head(features2, dense_w2, dense_b2,
                                        out_w2, out_b2, block_b=256)
    out2 = jax.block_until_ready(out2)
    ref2 = _reference(features2, dense_w2, dense_b2, out_w2, out_b2)

    assert out2.shape == (B2, L2)
    assert out2.dtype == jnp.float32
    assert jnp.allclose(out2, ref2, atol=5e-2, rtol=0), "multi-tile mismatch"
    assert jnp.allclose(jnp.sum(jnp.exp(out2), axis=-1), 1.0, atol=1e-3)

    print("KERNEL_OK")
</pallas_src>

<mosaic_0001>
module attributes {stable_mosaic.version = 11 : i64} {
  func.func @_head_kernel(%arg0: i32, %arg1: memref<8x32xf32, #tpu.memory_space<vmem>>, %arg2: memref<32x32xbf16, #tpu.memory_space<vmem>>, %arg3: memref<1x32xf32, #tpu.memory_space<vmem>>, %arg4: memref<32x128xbf16, #tpu.memory_space<vmem>>, %arg5: memref<1x128xf32, #tpu.memory_space<vmem>>, %arg6: memref<8x128xf32, #tpu.memory_space<vmem>>) attributes {dimension_semantics = [#tpu.dimension_semantics<parallel>], iteration_bounds = array<i64: 1>, scalar_prefetch = 0 : i64, scratch_operands = 0 : i64, tpu.core_type = #tpu.core_type<tc>, window_params = [{transform_indices = @transform_0, window_bounds = array<i64: 8, 32>}, {pipeline_mode = #tpu.pipeline_mode<synchronous>, transform_indices = @transform_1, window_bounds = array<i64: 32, 32>}, {pipeline_mode = #tpu.pipeline_mode<synchronous>, transform_indices = @transform_2, window_bounds = array<i64: 1, 32>}, {pipeline_mode = #tpu.pipeline_mode<synchronous>, transform_indices = @transform_3, window_bounds = array<i64: 32, 128>}, {pipeline_mode = #tpu.pipeline_mode<synchronous>, transform_indices = @transform_4, window_bounds = array<i64: 1, 128>}, {transform_indices = @transform_5, window_bounds = array<i64: 8, 128>}]} {
    %c0 = arith.constant 0 : index
    %c0_0 = arith.constant 0 : index
    %0 = vector.load %arg1[%c0, %c0_0] : memref<8x32xf32, #tpu.memory_space<vmem>>, vector<8x32xf32>
    %1 = arith.truncf %0 : vector<8x32xf32> to vector<8x32xbf16>
    %c0_1 = arith.constant 0 : index
    %c0_2 = arith.constant 0 : index
    %2 = vector.load %arg2[%c0_1, %c0_2] : memref<32x32xbf16, #tpu.memory_space<vmem>>, vector<32x32xbf16>
    %cst = arith.constant dense<0.000000e+00> : vector<8x32xf32>
    %3 = tpu.matmul %1, %2, %cst {dimension_numbers = #tpu.dot_dimension_numbers<[1], [0], [0], [1], [0, 0, 1, 1], [], []>} : vector<8x32xbf16>, vector<32x32xbf16>, vector<8x32xf32> -> vector<8x32xf32>
    %c0_3 = arith.constant 0 : index
    %c0_4 = arith.constant 0 : index
    %4 = vector.load %arg3[%c0_3, %c0_4] : memref<1x32xf32, #tpu.memory_space<vmem>>, vector<1x32xf32>
    %5 = vector.broadcast %4 : vector<1x32xf32> to vector<8x32xf32>
    %6 = arith.addf %3, %5 : vector<8x32xf32>
    %7 = arith.truncf %6 : vector<8x32xf32> to vector<8x32xbf16>
    %8 = math.tanh %7 : vector<8x32xbf16>
    %c0_5 = arith.constant 0 : index
    %c0_6 = arith.constant 0 : index
    %9 = vector.load %arg4[%c0_5, %c0_6] : memref<32x128xbf16, #tpu.memory_space<vmem>>, vector<32x128xbf16>
    %cst_7 = arith.constant dense<0.000000e+00> : vector<8x128xf32>
    %10 = tpu.matmul %8, %9, %cst_7 {dimension_numbers = #tpu.dot_dimension_numbers<[1], [0], [0], [1], [0, 0, 1, 1], [], []>} : vector<8x32xbf16>, vector<32x128xbf16>, vector<8x128xf32> -> vector<8x128xf32>
    %c0_8 = arith.constant 0 : index
    %c0_9 = arith.constant 0 : index
    %11 = vector.load %arg5[%c0_8, %c0_9] : memref<1x128xf32, #tpu.memory_space<vmem>>, vector<1x128xf32>
    %12 = vector.broadcast %11 : vector<1x128xf32> to vector<8x128xf32>
    %13 = arith.addf %10, %12 : vector<8x128xf32>
    %cst_10 = arith.constant dense<0xFF800000> : vector<8xf32>
    %14 = vector.multi_reduction <maximumf>, %13, %cst_10 [1] : vector<8x128xf32> to vector<8xf32>
    %15 = vector.shape_cast %14 : vector<8xf32> to vector<8x1xf32>
    %16 = vector.broadcast %15 : vector<8x1xf32> to vector<8x128xf32>
    %17 = arith.subf %13, %16 : vector<8x128xf32>
    %18 = math.exp %17 : vector<8x128xf32>
    %cst_11 = arith.constant dense<0.000000e+00> : vector<8xf32>
    %19 = vector.multi_reduction <add>, %18, %cst_11 [1] : vector<8x128xf32> to vector<8xf32>
    %20 = vector.shape_cast %19 : vector<8xf32> to vector<8x1xf32>
    %21 = math.log %20 : vector<8x1xf32>
    %22 = vector.broadcast %21 : vector<8x1xf32> to vector<8x128xf32>
    %23 = arith.subf %17, %22 : vector<8x128xf32>
    %c0_12 = arith.constant 0 : index
    %c0_13 = arith.constant 0 : index
    %24 = vector.load %arg6[%c0_12, %c0_13] : memref<8x128xf32, #tpu.memory_space<vmem>>, vector<8x128xf32>
    tpu.vector_store %arg6[%c0_12, %c0_13], %23 {strides = array<i32>} : memref<8x128xf32, #tpu.memory_space<vmem>>, vector<8x128xf32>,
    return
  }
  func.func @transform_0(%arg0: i32) -> (i32, i32) {
    %c0_i32 = arith.constant 0 : i32
    %c0_i32_0 = arith.constant 0 : i32
    return %arg0, %c0_i32 : i32, i32
  }
  func.func @transform_1(%arg0: i32) -> (i32, i32) {
    %c0_i32 = arith.constant 0 : i32
    %c0_i32_0 = arith.constant 0 : i32
    %c0_i32_1 = arith.constant 0 : i32
    return %c0_i32, %c0_i32_0 : i32, i32
  }
  func.func @transform_2(%arg0: i32) -> (i32, i32) {
    %c0_i32 = arith.constant 0 : i32
    %c0_i32_0 = arith.constant 0 : i32
    %c0_i32_1 = arith.constant 0 : i32
    return %c0_i32, %c0_i32_0 : i32, i32
  }
  func.func @transform_3(%arg0: i32) -> (i32, i32) {
    %c0_i32 = arith.constant 0 : i32
    %c0_i32_0 = arith.constant 0 : i32
    %c0_i32_1 = arith.constant 0 : i32
    return %c0_i32, %c0_i32_0 : i32, i32
  }
  func.func @transform_4(%arg0: i32) -> (i32, i32) {
    %c0_i32 = arith.constant 0 : i32
    %c0_i32_0 = arith.constant 0 : i32
    %c0_i32_1 = arith.constant 0 : i32
    return %c0_i32, %c0_i32_0 : i32, i32
  }
  func.func @transform_5(%arg0: i32) -> (i32, i32) {
    %c0_i32 = arith.constant 0 : i32
    %c0_i32_0 = arith.constant 0 : i32
    return %arg0, %c0_i32 : i32, i32
  }
}

</mosaic_0001>

<bundles_post_ra>
// kernel: tpu_custom_call.1
= control target key start
LH: loop header
LB: loop body
LE: loop exit
PB: predicated region body
PF: predicated region fallthrough
CT: control target
= control target key end

     0   :  { %10 = vsyncpa [#allocation3], 0  ;;  %s467_s0 = inlined_call_operand.hbm [shape: f32[8,32], index: 0, kind: input, shape index: {}]   ;;  %s468_s1 = inlined_call_operand.hbm [shape: bf16[32,32], index: 1, kind: input, shape index: {}]   ;;  %s469_s2 = inlined_call_operand.vmem [shape: f32[1,32], index: 2, kind: input, shape index: {}]   ;;  %s470_s3 = inlined_call_operand.hbm [shape: bf16[32,128], index: 3, kind: input, shape index: {}]   ;;  %s471_s4 = inlined_call_operand.vmem [shape: f32[1,128], index: 4, kind: input, shape index: {}]   ;;  %s472_s5 = inlined_call_operand.hbm [shape: f32[8,128], index: 5, kind: output, shape index: {}]  }
   0x1   :  { %11 = vsyncpa [#allocation6], 0 }
   0x2   :  { %12 = vsyncpa [#allocation4], 0  ;;  %s367_s18 = smov [#allocation5]   ;;  %s273_s22 = scalar_lea.hbm %s468_s1, 256 }
   0x3   :  { %s28_s19 = sshll.u32 %s367_s18, 4  ;;  %p274_p0 = scmp.ne.s32.totalorder %s468_s1, %s273_s22  ;;  %s29_s19 = int_to_ptr.vmem [resolvable:$true] %s28_s19 }
   0x4   :  { %p277_p1 = scmp.lt.u32.totalorder %s273_s22, %s468_s1 }
   0x6   :  { %p279_p2 = pnand %p277_p1, %p274_p0 }
   0x8   :  { %282 = shalt.err (!%p279_p2)
}
   0x9   :  { %s283_s27 = scalar_lea.vmem %s29_s19, 256  ;;  %p288_p4 = scmp.lt.s32.totalorder %s29_s19, %s29_s19 }
   0xa   :  { %p284_p3 = scmp.ne.s32.totalorder %s29_s19, %s283_s27  ;;  %p289_p5 = scmp.lt.s32.totalorder %s283_s27, %s283_s27 }
   0xc   :  { %p290_p6 = por %p289_p5, %p288_p4 }
   0xe   :  { %p291_p7 = pnand %p290_p6, %p284_p3 }
  0x10   :  { %294 = shalt.err (!%p291_p7)
}
  0x11   :  { %s368_s28 = smov 64   ;;  %s369_s29 = smov 4  }
  0x12   :  { %34 = dma.hbm_to_vmem [thread:$0]  %s468_s1, 256, %s29_s19, [#allocation6], %s368_s28, %s368_s28, %s369_s29  }
  0x13   :  { %s370_s7 = smov [#allocation2]   ;;  %s371_s9 = smov [#allocation7]  }
  0x14   :  { %s19_s8 = sshll.u32 %s370_s7, 4  ;;  %s42_s10 = sshll.u32 %s371_s9, 4  ;;  %s20_s8 = int_to_ptr.vmem [resolvable:$true] %s19_s8  ;;  %s43_s10 = int_to_ptr.vmem [resolvable:$true] %s42_s10 }
  0x15   :  { %s295_s13 = scalar_lea.hbm %s467_s0, 128 }
  0x16   :  { %p296_p8 = scmp.ne.s32.totalorder %s467_s0, %s295_s13  ;;  %p299_p9 = scmp.lt.u32.totalorder %s295_s13, %s467_s0 }
  0x18   :  { %p301_p10 = pnand %p299_p9, %p296_p8 }
  0x1a   :  { %304 = shalt.err (!%p301_p10)
}
  0x1b   :  { %s305_s1 = scalar_lea.vmem %s20_s8, 128  ;;  %p310_p12 = scmp.lt.s32.totalorder %s20_s8, %s20_s8 }
  0x1c   :  { %p306_p11 = scmp.ne.s32.totalorder %s20_s8, %s305_s1  ;;  %p311_p13 = scmp.lt.s32.totalorder %s305_s1, %s305_s1 }
  0x1e   :  { %p312_p0 = por %p311_p13, %p310_p12 }
  0x20   :  { %p313_p1 = pnand %p312_p0, %p306_p11 }
  0x22   :  { %316 = shalt.err (!%p313_p1)
}
  0x23   :  { %22 = dma.hbm_to_vmem [thread:$0]  %s467_s0, 128, %s20_s8, [#allocation3]  }
  0x24   :  { %s317_s22 = scalar_lea.hbm %s470_s3, 256 }
  0x25   :  { %p318_p2 = scmp.ne.s32.totalorder %s470_s3, %s317_s22  ;;  %p321_p3 = scmp.lt.u32.totalorder %s317_s22, %s470_s3 }
  0x27   :  { %p323_p4 = pnand %p321_p3, %p318_p2 }
  0x29   :  { %326 = shalt.err (!%p323_p4)
}
  0x2a   :  { %s327_s27 = scalar_lea.vmem %s43_s10, 256  ;;  %p332_p6 = scmp.lt.s32.totalorder %s43_s10, %s43_s10 }
  0x2b   :  { %p328_p5 = scmp.ne.s32.totalorder %s43_s10, %s327_s27  ;;  %p333_p7 = scmp.lt.s32.totalorder %s327_s27, %s327_s27 }
  0x2d   :  { %p334_p8 = por %p333_p7, %p332_p6 }
  0x2f   :  { %p335_p9 = pnand %p334_p8, %p328_p5 }
  0x31   :  { %338 = shalt.err (!%p335_p9)
}
  0x32   :  { %48 = dma.hbm_to_vmem [thread:$0]  %s470_s3, 256, %s43_s10, [#allocation6], %s368_s28, %s368_s28, %s369_s29  }
  0x33   :  { %361 = dma.done.wait [#allocation3], 128  }
  0x34   :  { %362 = vsyncadd [#allocation3], 4294967168 }
  0x35   :  { %363 = dma.done.wait [#allocation6], 512  }
  0x36   :  { %364 = vsyncadd [#allocation6], 4294966784  ;;  %v372_v0 = vmov 0.0   ;;  %vm373_vm0 = vmmov 0   ;;  %v263_v1 = vld [vmem:[#allocation5] sm:$0xff]   ;;  %v264_v2 = vld [vmem:[#allocation5 + $0x8] sm:$0xff]  }
  0x37   :  { %239 = vmatprep.subr.bf16.mxu0 %v372_v0  ;;  %243 = vmatprep.mubr.msk.bf16.mxu0 %vm373_vm0, %v372_v0  ;;  %v61_v3 = vld [vmem:[#allocation2] sm:$0xff]  ;;  %vm86_vm1 = vcmask 261120   ;;  %v265_v5 = vld [vmem:[#allocation7] sm:$0xff]  }
  0x38   :  { %247 = vmatprep.subr.bf16.mxu1 %v372_v0  ;;  %251 = vmatprep.mubr.msk.bf16.mxu1 %vm373_vm0, %v372_v0  ;;  %v62_v4 = vpack.c.bf16 %v61_v3, %v61_v3  ;;  %v266_v6 = vld [vmem:[#allocation7 + $0x8] sm:$0xff]  }
  0x39   :  { %240 = vmatpush3.bf16.msra.mxu0 %v263_v1  ;;  %248 = vmatpush3.bf16.msra.mxu1 %v265_v5  ;;  %v225_v7 = vld [vmem:[%s469_s2] ss:$0 sm:$0xff]  ;;  %s374_s2 = smov [#allocation8]  }
  0x3a   :  { %241 = vmatprep.subr.bf16.mxu0 %v372_v0  ;;  %249 = vmatprep.subr.bf16.mxu1 %v372_v0  ;;  %v229_v15 = vld [vmem:[%s471_s4] ss:$0 sm:$0xff]  ;;  %s215_s7 = sshll.u32 %s374_s2, 4  ;;  %s216_s7 = int_to_ptr.vmem [resolvable:$true] %s215_s7 }
  0x3b   :  { %s339_s4 = scalar_lea.vmem %s216_s7, 128  ;;  %p344_p11 = scmp.lt.s32.totalorder %s216_s7, %s216_s7 }
  0x3c   :  { %p340_p10 = scmp.ne.s32.totalorder %s216_s7, %s339_s4  ;;  %p345_p12 = scmp.lt.s32.totalorder %s339_s4, %s339_s4 }
  0x3d   :  { %242 = vmatpush3.bf16.msra.mxu0 %v264_v2  ;;  %250 = vmatpush3.bf16.msra.mxu1 %v266_v6 }
  0x3e   :  { %p346_p13 = por %p345_p12, %p344_p11 }
  0x40   :  { %244 = vmatmul.mubr.msk.bf16.vlgmr.msra.gmra.mrb[0].mxu0 %vm86_vm1, %v62_v4  ;;  %p347_p0 = pnand %p346_p13, %p340_p10 }
 0x113   :  { %v124_v8 = vpop.f32.mrb[0].mxu0 }
 0x114   :  { %v125_v9 = vadd.f32 %v225_v7, %v124_v8  ;;  %v245_v10 = vpop.f32.mrb[1].mxu0 }
 0x115   :  { %v127_v11 = vpop.f32.mrb[2].mxu0 }
 0x116   :  { %v130_v12 = vpack.c.bf16 %v125_v9, %v125_v9  ;;  %v246_v13 = vpop.f32.mrb[3].mxu0 }
 0x118   :  { %267 = vtanh.bf16 %v130_v12 }
 0x123   :  { %v268_v14 = vpop.eup %267 }
 0x124   :  { %252 = vmatmul.mubr.msk.bf16.vlgmr.msra.gmra.mrb[0].mxu1 %vm86_vm1, %v268_v14 }
 0x1f7   :  { %v192_v16 = vpop.f32.mrb[0].mxu1 }
 0x1f8   :  { %v193_v17 = vadd.f32 %v229_v15, %v192_v16  ;;  %v253_v18 = vpop.f32.mrb[1].mxu1 }
 0x1f9   :  { %v195_v19 = vpop.f32.mrb[2].mxu1 }
 0x1fa   :  { %198 = vmax.xlane.f32.xlu0 %v193_v17  ;;  %v254_v20 = vpop.f32.mrb[3].mxu1 }
 0x287   :  { %v199_v21 = vpop.xlane.xlu0 %198 }
 0x288   :  { %v200_v22 = vsub.f32 %v193_v17, %v199_v21 }
 0x28a   :  { %v201_v23 = vmul.f32 1.442695, %v200_v22 }
 0x28c   :  { %269 = vpow2.f32 %v201_v23 }
 0x296   :  { %v270_v24 = vpop.eup %269 }
 0x297   :  { %203 = vadd.xlane.f32.xlu0 %v270_v24 }
 0x324   :  { %v204_v25 = vpop.xlane.xlu0 %203 }
 0x325   :  { %271 = vlog2.f32 %v204_v25 }
 0x32f   :  { %v272_v26 = vpop.eup %271 }
 0x330   :  { %v206_v27 = vmul.f32 0.6931472, %v272_v26 }
 0x332   :  { %v207_v28 = vsub.f32 %v200_v22, %v206_v27 }
 0x334   :  { %208 = vst [vmem:[#allocation8] sm:$0xff] %v207_v28 }
 0x335   :  { %350 = shalt.err (!%p347_p0)
}
 0x336   :  { %s351_s10 = scalar_lea.hbm %s472_s5, 128 }
 0x337   :  { %p352_p1 = scmp.ne.s32.totalorder %s472_s5, %s351_s10  ;;  %p355_p2 = scmp.lt.u32.totalorder %s351_s10, %s472_s5 }
 0x339   :  { %p357_p3 = pnand %p355_p2, %p352_p1 }
 0x33b   :  { %360 = shalt.err (!%p357_p3)
}
 0x33c   :  { %218 = dma.vmem_to_hbm [thread:$0]  %s216_s7, 128, %s472_s5, [#allocation4]  }
 0x33d   :  { %365 = dma.done.wait [#allocation4], 128  }
 0x33e   :  { %366 = vsyncadd [#allocation4], 4294967168 }
 0x33f   :  { %222 = vsyncpa [#allocation3], 1 }
 0x340   :  { %223 = vsyncpa [#allocation6], 1 }
 0x341   :  { %224 = vsyncpa [#allocation4], 1 }

</bundles_post_ra>
